<compile_context>
chip_gen: v7x
topology: tpu7x:2x2x1
jax: 0.10.0
libtpu: 0.0.40
codegen_flags: <defaults>
</compile_context>

<pallas_src>
import functools

import jax
import jax.numpy as jnp
from jax import lax
from jax.experimental import pallas as pl
from jax.experimental.pallas import tpu as pltpu

EPS = 1e-5  # nn.InstanceNorm2d default eps


def _fused_resblock_kernel(x_ref, b1_ref, b2_ref, p_ref, out_ref, pad_sc,
                           *, H, W, C):
    """One batch element, lane-dense (H, W*C) activations.

    out = IN(conv2(relu(IN(conv1(x))))) + x
    """
    WC = W * C
    inv_hw = 1.0 / (H * W)
    mxu_dtype = b1_ref.dtype            # bf16 (or f32) conv operands
    p_mat = p_ref[...]                  # (WC, WC) tiled identity, loaded once

    # ---- in-kernel zero padding along H (border rows of the scratch) -------
    zero_row = jnp.zeros((1, WC), jnp.float32)
    pad_sc[0:1, :] = zero_row
    pad_sc[H + 1:H + 2, :] = zero_row
    pad_sc[1:H + 1, :] = x_ref[0].astype(jnp.float32)

    def conv3x3(band_ref):
        # All dx taps + the W-edge zero padding live inside the (WC, WC)
        # banded weight matrix, so a 3x3 conv is just 3 lane-dense matmuls
        # with f32 accumulation.
        acc = jnp.zeros((H, WC), jnp.float32)
        for dy in range(3):
            lhs = pad_sc[dy:dy + H, :].astype(mxu_dtype)
            acc = acc + jnp.dot(lhs, band_ref[dy],
                                preferred_element_type=jnp.float32)
        return acc

    def instance_norm(acc):
        # One pass over acc: per-(w,c) column sums + sums of squares (cheap
        # sublane reduce), then one tiny MXU matmul with the tiled identity
        # both reduces over W and broadcasts the per-channel totals back to
        # every (w, c) lane — normalization stays pure VPU after it.
        col_sum = jnp.sum(acc, axis=0, keepdims=True)
        col_sq = jnp.sum(acc * acc, axis=0, keepdims=True)
        stats = jnp.concatenate([col_sum, col_sq], axis=0)           # (2, WC)
        stats_bc = jnp.dot(stats, p_mat,
                           preferred_element_type=jnp.float32)       # (2, WC)
        mean = stats_bc[0:1] * inv_hw
        var = stats_bc[1:2] * inv_hw - mean * mean                   # biased
        return (acc - mean) * lax.rsqrt(var + EPS)

    # conv1 -> IN -> ReLU   (conv bias omitted: cancelled exactly by IN)
    h1 = jnp.maximum(instance_norm(conv3x3(b1_ref)), 0.0)

    # conv2 -> IN -> + residual   (border rows of pad_sc are still zero)
    pad_sc[1:H + 1, :] = h1
    h2 = instance_norm(conv3x3(b2_ref))
    out_ref[0] = (h2 + x_ref[0].astype(jnp.float32)).astype(out_ref.dtype)


def _band_weight_matrices(w, W):
    """(3,3,Cin,Cout) HWIO conv weights -> (3, W*Cin, W*Cout) banded matrices.

    B[dy][wi*Cin + ci, wo*Cout + co] = w[dy, wi - wo + 1, ci, co] inside the
    3-wide band, 0 outside — bakes the dx taps AND the zero padding along W
    directly into the matmul operand.
    """
    kh, kw, Cin, Cout = w.shape
    idx = jnp.arange(W)
    bands = []
    for dy in range(kh):
        B = jnp.zeros((W, Cin, W, Cout), jnp.float32)
        for dx in range(kw):
            sel = (idx[:, None] == idx[None, :] + (dx - 1)).astype(jnp.float32)
            B = B + sel[:, None, :, None] * w[dy, dx][None, :, None, :]
        bands.append(B.reshape(W * Cin, W * Cout))
    return jnp.stack(bands)


def prepare_res_block(params, W, compute_dtype=jnp.bfloat16):
    """One-time weight transform (cache alongside the weights).

    bf16 conv operands + f32 accumulation per v6e/v7x guidance; pass
    compute_dtype=jnp.float32 if full f32 conv precision is required.
    Conv biases are intentionally dropped — InstanceNorm with no affine
    subtracts the per-channel mean right after each conv, so they cancel.
    """
    Cin = params["w1"].shape[2]
    return {
        "b1": _band_weight_matrices(params["w1"], W).astype(compute_dtype),
        "b2": _band_weight_matrices(params["w2"], W).astype(compute_dtype),
        # Tiled identity: reduces over W and broadcasts per-channel stats.
        "p": jnp.tile(jnp.eye(Cin, dtype=jnp.float32), (W, W)),
    }


@jax.jit
def res_block(x, prep):
    """Fused ResBlock forward. x: (N, H, W, C) NHWC float32."""
    N, H, W, C = x.shape
    WC = W * C
    x_flat = x.reshape(N, H, WC)      # lane-dense: last dim = W*C (=128 here)

    kernel = functools.partial(_fused_resblock_kernel, H=H, W=W, C=C)

    out = pl.pallas_call(
        kernel,
        out_shape=jax.ShapeDtypeStruct((N, H, WC), x.dtype),
        # One grid step = whole ResBlock for one image, so the ~0.35us
        # per-step pipeline overhead is amortized; the batch axis stays
        # "parallel" so v7x's two TensorCores each take an image.
        # TODO(synk): for real generator sizes (C>=64, large H/W) switch to a
        # channel-dense layout with an H-tiled grid + 1-row halo and two-pass
        # InstanceNorm so blocks fit v7x's 64 MiB VMEM.
        grid=(N,),
        in_specs=[
            pl.BlockSpec((1, H, WC), lambda n: (n, 0, 0)),
            pl.BlockSpec((3, WC, WC), lambda n: (0, 0, 0)),
            pl.BlockSpec((3, WC, WC), lambda n: (0, 0, 0)),
            pl.BlockSpec((WC, WC), lambda n: (0, 0)),
        ],
        out_specs=pl.BlockSpec((1, H, WC), lambda n: (n, 0, 0)),
        scratch_shapes=[pltpu.VMEM((H + 2, WC), jnp.float32)],
        compiler_params=pltpu.CompilerParams(
            dimension_semantics=("parallel",)),
    )(x_flat, prep["b1"], prep["b2"], prep["p"])
    return out.reshape(N, H, W, C)


# ------------------------- pure-JAX references -----------------------------
def _ref_res_block(x, params, conv_dtype=jnp.float32):
    """Reference ResBlock (conv bias included, as in the PyTorch module)."""
    def conv(z, w, b):
        y = lax.conv_general_dilated(
            z.astype(conv_dtype), w.astype(conv_dtype),
            window_strides=(1, 1), padding="SAME",
            dimension_numbers=("NHWC", "HWIO", "NHWC"),
            preferred_element_type=jnp.float32)
        return y + b

    def inorm(z):
        mean = jnp.mean(z, axis=(1, 2), keepdims=True)
        var = jnp.mean((z - mean) ** 2, axis=(1, 2), keepdims=True)
        return (z - mean) * lax.rsqrt(var + EPS)

    h = jax.nn.relu(inorm(conv(x, params["w1"], params["b1"])))
    return inorm(conv(h, params["w2"], params["b2"])) + x


if __name__ == "__main__":
    N, H, W, C = 2, 16, 16, 8      # dim = C; W*C = 128 -> fully lane-dense

    key = jax.random.PRNGKey(0)
    kx, kw1, kb1, kw2, kb2 = jax.random.split(key, 5)
    x = jax.random.normal(kx, (N, H, W, C), dtype=jnp.float32)
    params = {
        "w1": 0.1 * jax.random.normal(kw1, (3, 3, C, C), dtype=jnp.float32),
        "b1": 0.05 * jax.random.normal(kb1, (C,), dtype=jnp.float32),
        "w2": 0.1 * jax.random.normal(kw2, (3, 3, C, C), dtype=jnp.float32),
        "b2": 0.05 * jax.random.normal(kb2, (C,), dtype=jnp.float32),
    }

    prep = prepare_res_block(params, W, compute_dtype=jnp.bfloat16)
    out = jax.block_until_ready(res_block(x, prep))

    # Structural check: reference whose convs also use bf16 operands.
    ref_bf16 = jax.block_until_ready(
        _ref_res_block(x, params, conv_dtype=jnp.bfloat16))
    # Semantic check vs pure-f32 reference (difference = bf16 operand rounding
    # in the convs only; everything else is computed in f32).
    ref_f32 = jax.block_until_ready(_ref_res_block(x, params))

    assert out.shape == (N, H, W, C)
    assert float(jnp.max(jnp.abs(out - ref_bf16))) < 5e-3, \
        "mismatch vs matched-precision reference"
    assert float(jnp.max(jnp.abs(out - ref_f32))) < 7.5e-2, \
        "mismatch vs f32 reference"
    print("KERNEL_OK")
</pallas_src>

<mosaic_0001>
module attributes {stable_mosaic.version = 11 : i64} {
  func.func @_fused_resblock_kernel(%arg0: i32, %arg1: memref<1x16x128xf32, #tpu.memory_space<vmem>>, %arg2: memref<3x128x128xbf16, #tpu.memory_space<vmem>>, %arg3: memref<3x128x128xbf16, #tpu.memory_space<vmem>>, %arg4: memref<128x128xf32, #tpu.memory_space<vmem>>, %arg5: memref<1x16x128xf32, #tpu.memory_space<vmem>>, %arg6: memref<18x128xf32, #tpu.memory_space<vmem>>) attributes {dimension_semantics = [#tpu.dimension_semantics<parallel>], iteration_bounds = array<i64: 2>, scalar_prefetch = 0 : i64, scratch_operands = 1 : i64, tpu.core_type = #tpu.core_type<tc>, window_params = [{transform_indices = @transform_0, window_bounds = array<i64: 1, 16, 128>}, {pipeline_mode = #tpu.pipeline_mode<synchronous>, transform_indices = @transform_1, window_bounds = array<i64: 3, 128, 128>}, {pipeline_mode = #tpu.pipeline_mode<synchronous>, transform_indices = @transform_2, window_bounds = array<i64: 3, 128, 128>}, {pipeline_mode = #tpu.pipeline_mode<synchronous>, transform_indices = @transform_3, window_bounds = array<i64: 128, 128>}, {transform_indices = @transform_4, window_bounds = array<i64: 1, 16, 128>}]} {
    %c0 = arith.constant 0 : index
    %c0_0 = arith.constant 0 : index
    %0 = vector.load %arg4[%c0, %c0_0] : memref<128x128xf32, #tpu.memory_space<vmem>>, vector<128x128xf32>
    %cst = arith.constant 0.000000e+00 : f32
    %1 = vector.broadcast %cst : f32 to vector<1x128xf32>
    %c0_1 = arith.constant 0 : index
    %c0_2 = arith.constant 0 : index
    %2 = vector.load %arg6[%c0_1, %c0_2] : memref<18x128xf32, #tpu.memory_space<vmem>>, vector<1x128xf32>
    tpu.vector_store %arg6[%c0_1, %c0_2], %1 {strides = array<i32>} : memref<18x128xf32, #tpu.memory_space<vmem>>, vector<1x128xf32>,
    %c17 = arith.constant 17 : index
    %c0_3 = arith.constant 0 : index
    %3 = vector.load %arg6[%c17, %c0_3] : memref<18x128xf32, #tpu.memory_space<vmem>>, vector<1x128xf32>
    tpu.vector_store %arg6[%c17, %c0_3], %1 {strides = array<i32>} : memref<18x128xf32, #tpu.memory_space<vmem>>, vector<1x128xf32>,
    %c0_4 = arith.constant 0 : index
    %c0_5 = arith.constant 0 : index
    %c0_6 = arith.constant 0 : index
    %4 = vector.load %arg1[%c0_4, %c0_5, %c0_6] : memref<1x16x128xf32, #tpu.memory_space<vmem>>, vector<1x16x128xf32>
    %5 = vector.shape_cast %4 : vector<1x16x128xf32> to vector<16x128xf32>
    %c1 = arith.constant 1 : index
    %c0_7 = arith.constant 0 : index
    %6 = vector.load %arg6[%c1, %c0_7] : memref<18x128xf32, #tpu.memory_space<vmem>>, vector<16x128xf32>
    tpu.vector_store %arg6[%c1, %c0_7], %5 {strides = array<i32>} : memref<18x128xf32, #tpu.memory_space<vmem>>, vector<16x128xf32>,
    %cst_8 = arith.constant 0.000000e+00 : f32
    %7 = vector.broadcast %cst_8 : f32 to vector<16x128xf32>
    %c0_9 = arith.constant 0 : index
    %c0_10 = arith.constant 0 : index
    %8 = vector.load %arg6[%c0_9, %c0_10] : memref<18x128xf32, #tpu.memory_space<vmem>>, vector<16x128xf32>
    %9 = arith.truncf %8 : vector<16x128xf32> to vector<16x128xbf16>
    %c0_11 = arith.constant 0 : index
    %c0_12 = arith.constant 0 : index
    %c0_13 = arith.constant 0 : index
    %10 = vector.load %arg2[%c0_11, %c0_12, %c0_13] : memref<3x128x128xbf16, #tpu.memory_space<vmem>>, vector<1x128x128xbf16>
    %11 = vector.shape_cast %10 : vector<1x128x128xbf16> to vector<128x128xbf16>
    %cst_14 = arith.constant dense<0.000000e+00> : vector<16x128xf32>
    %12 = tpu.matmul %9, %11, %cst_14 {dimension_numbers = #tpu.dot_dimension_numbers<[1], [0], [0], [1], [0, 0, 1, 1], [], []>} : vector<16x128xbf16>, vector<128x128xbf16>, vector<16x128xf32> -> vector<16x128xf32>
    %13 = arith.addf %7, %12 : vector<16x128xf32>
    %c1_15 = arith.constant 1 : index
    %c0_16 = arith.constant 0 : index
    %14 = vector.load %arg6[%c1_15, %c0_16] : memref<18x128xf32, #tpu.memory_space<vmem>>, vector<16x128xf32>
    %15 = arith.truncf %14 : vector<16x128xf32> to vector<16x128xbf16>
    %c1_17 = arith.constant 1 : index
    %c0_18 = arith.constant 0 : index
    %c0_19 = arith.constant 0 : index
    %16 = vector.load %arg2[%c1_17, %c0_18, %c0_19] : memref<3x128x128xbf16, #tpu.memory_space<vmem>>, vector<1x128x128xbf16>
    %17 = vector.shape_cast %16 : vector<1x128x128xbf16> to vector<128x128xbf16>
    %cst_20 = arith.constant dense<0.000000e+00> : vector<16x128xf32>
    %18 = tpu.matmul %15, %17, %cst_20 {dimension_numbers = #tpu.dot_dimension_numbers<[1], [0], [0], [1], [0, 0, 1, 1], [], []>} : vector<16x128xbf16>, vector<128x128xbf16>, vector<16x128xf32> -> vector<16x128xf32>
    %19 = arith.addf %13, %18 : vector<16x128xf32>
    %c2 = arith.constant 2 : index
    %c0_21 = arith.constant 0 : index
    %20 = vector.load %arg6[%c2, %c0_21] : memref<18x128xf32, #tpu.memory_space<vmem>>, vector<16x128xf32>
    %21 = arith.truncf %20 : vector<16x128xf32> to vector<16x128xbf16>
    %c2_22 = arith.constant 2 : index
    %c0_23 = arith.constant 0 : index
    %c0_24 = arith.constant 0 : index
    %22 = vector.load %arg2[%c2_22, %c0_23, %c0_24] : memref<3x128x128xbf16, #tpu.memory_space<vmem>>, vector<1x128x128xbf16>
    %23 = vector.shape_cast %22 : vector<1x128x128xbf16> to vector<128x128xbf16>
    %cst_25 = arith.constant dense<0.000000e+00> : vector<16x128xf32>
    %24 = tpu.matmul %21, %23, %cst_25 {dimension_numbers = #tpu.dot_dimension_numbers<[1], [0], [0], [1], [0, 0, 1, 1], [], []>} : vector<16x128xbf16>, vector<128x128xbf16>, vector<16x128xf32> -> vector<16x128xf32>
    %25 = arith.addf %19, %24 : vector<16x128xf32>
    %cst_26 = arith.constant dense<0.000000e+00> : vector<128xf32>
    %26 = vector.multi_reduction <add>, %25, %cst_26 [0] : vector<16x128xf32> to vector<128xf32>
    %27 = vector.shape_cast %26 : vector<128xf32> to vector<1x128xf32>
    %28 = arith.mulf %25, %25 : vector<16x128xf32>
    %cst_27 = arith.constant dense<0.000000e+00> : vector<128xf32>
    %29 = vector.multi_reduction <add>, %28, %cst_27 [0] : vector<16x128xf32> to vector<128xf32>
    %30 = vector.shape_cast %29 : vector<128xf32> to vector<1x128xf32>
    %31 = tpu.concatenate %27, %30 in 0 : vector<1x128xf32>, vector<1x128xf32> -> vector<2x128xf32>
    %cst_28 = arith.constant dense<0.000000e+00> : vector<2x128xf32>
    %32 = tpu.matmul %31, %0, %cst_28 {dimension_numbers = #tpu.dot_dimension_numbers<[1], [0], [0], [1], [0, 0, 1, 1], [], []>} : vector<2x128xf32>, vector<128x128xf32>, vector<2x128xf32> -> vector<2x128xf32>
    %33 = vector.extract_strided_slice %32 {offsets = [0, 0], sizes = [1, 128], strides = [1, 1]} : vector<2x128xf32> to vector<1x128xf32>
    %cst_29 = arith.constant 3.906250e-03 : f32
    %34 = vector.broadcast %cst_29 : f32 to vector<1x128xf32>
    %35 = arith.mulf %33, %34 : vector<1x128xf32>
    %36 = vector.extract_strided_slice %32 {offsets = [1, 0], sizes = [1, 128], strides = [1, 1]} : vector<2x128xf32> to vector<1x128xf32>
    %cst_30 = arith.constant 3.906250e-03 : f32
    %37 = vector.broadcast %cst_30 : f32 to vector<1x128xf32>
    %38 = arith.mulf %36, %37 : vector<1x128xf32>
    %39 = arith.mulf %35, %35 : vector<1x128xf32>
    %40 = arith.subf %38, %39 : vector<1x128xf32>
    %41 = vector.broadcast %35 : vector<1x128xf32> to vector<16x128xf32>
    %42 = arith.subf %25, %41 : vector<16x128xf32>
    %cst_31 = arith.constant 9.99999974E-6 : f32
    %43 = vector.broadcast %cst_31 : f32 to vector<1x128xf32>
    %44 = arith.addf %40, %43 : vector<1x128xf32>
    %45 = math.rsqrt %44 : vector<1x128xf32>
    %46 = vector.broadcast %45 : vector<1x128xf32> to vector<16x128xf32>
    %47 = arith.mulf %42, %46 : vector<16x128xf32>
    %cst_32 = arith.constant 0.000000e+00 : f32
    %48 = vector.broadcast %cst_32 : f32 to vector<16x128xf32>
    %49 = arith.maximumf %47, %48 : vector<16x128xf32>
    %c1_33 = arith.constant 1 : index
    %c0_34 = arith.constant 0 : index
    %50 = vector.load %arg6[%c1_33, %c0_34] : memref<18x128xf32, #tpu.memory_space<vmem>>, vector<16x128xf32>
    tpu.vector_store %arg6[%c1_33, %c0_34], %49 {strides = array<i32>} : memref<18x128xf32, #tpu.memory_space<vmem>>, vector<16x128xf32>,
    %cst_35 = arith.constant 0.000000e+00 : f32
    %51 = vector.broadcast %cst_35 : f32 to vector<16x128xf32>
    %c0_36 = arith.constant 0 : index
    %c0_37 = arith.constant 0 : index
    %52 = vector.load %arg6[%c0_36, %c0_37] : memref<18x128xf32, #tpu.memory_space<vmem>>, vector<16x128xf32>
    %53 = arith.truncf %52 : vector<16x128xf32> to vector<16x128xbf16>
    %c0_38 = arith.constant 0 : index
    %c0_39 = arith.constant 0 : index
    %c0_40 = arith.constant 0 : index
    %54 = vector.load %arg3[%c0_38, %c0_39, %c0_40] : memref<3x128x128xbf16, #tpu.memory_space<vmem>>, vector<1x128x128xbf16>
    %55 = vector.shape_cast %54 : vector<1x128x128xbf16> to vector<128x128xbf16>
    %cst_41 = arith.constant dense<0.000000e+00> : vector<16x128xf32>
    %56 = tpu.matmul %53, %55, %cst_41 {dimension_numbers = #tpu.dot_dimension_numbers<[1], [0], [0], [1], [0, 0, 1, 1], [], []>} : vector<16x128xbf16>, vector<128x128xbf16>, vector<16x128xf32> -> vector<16x128xf32>
    %57 = arith.addf %51, %56 : vector<16x128xf32>
    %c1_42 = arith.constant 1 : index
    %c0_43 = arith.constant 0 : index
    %58 = vector.load %arg6[%c1_42, %c0_43] : memref<18x128xf32, #tpu.memory_space<vmem>>, vector<16x128xf32>
    %59 = arith.truncf %58 : vector<16x128xf32> to vector<16x128xbf16>
    %c1_44 = arith.constant 1 : index
    %c0_45 = arith.constant 0 : index
    %c0_46 = arith.constant 0 : index
    %60 = vector.load %arg3[%c1_44, %c0_45, %c0_46] : memref<3x128x128xbf16, #tpu.memory_space<vmem>>, vector<1x128x128xbf16>
    %61 = vector.shape_cast %60 : vector<1x128x128xbf16> to vector<128x128xbf16>
    %cst_47 = arith.constant dense<0.000000e+00> : vector<16x128xf32>
    %62 = tpu.matmul %59, %61, %cst_47 {dimension_numbers = #tpu.dot_dimension_numbers<[1], [0], [0], [1], [0, 0, 1, 1], [], []>} : vector<16x128xbf16>, vector<128x128xbf16>, vector<16x128xf32> -> vector<16x128xf32>
    %63 = arith.addf %57, %62 : vector<16x128xf32>
    %c2_48 = arith.constant 2 : index
    %c0_49 = arith.constant 0 : index
    %64 = vector.load %arg6[%c2_48, %c0_49] : memref<18x128xf32, #tpu.memory_space<vmem>>, vector<16x128xf32>
    %65 = arith.truncf %64 : vector<16x128xf32> to vector<16x128xbf16>
    %c2_50 = arith.constant 2 : index
    %c0_51 = arith.constant 0 : index
    %c0_52 = arith.constant 0 : index
    %66 = vector.load %arg3[%c2_50, %c0_51, %c0_52] : memref<3x128x128xbf16, #tpu.memory_space<vmem>>, vector<1x128x128xbf16>
    %67 = vector.shape_cast %66 : vector<1x128x128xbf16> to vector<128x128xbf16>
    %cst_53 = arith.constant dense<0.000000e+00> : vector<16x128xf32>
    %68 = tpu.matmul %65, %67, %cst_53 {dimension_numbers = #tpu.dot_dimension_numbers<[1], [0], [0], [1], [0, 0, 1, 1], [], []>} : vector<16x128xbf16>, vector<128x128xbf16>, vector<16x128xf32> -> vector<16x128xf32>
    %69 = arith.addf %63, %68 : vector<16x128xf32>
    %cst_54 = arith.constant dense<0.000000e+00> : vector<128xf32>
    %70 = vector.multi_reduction <add>, %69, %cst_54 [0] : vector<16x128xf32> to vector<128xf32>
    %71 = vector.shape_cast %70 : vector<128xf32> to vector<1x128xf32>
    %72 = arith.mulf %69, %69 : vector<16x128xf32>
    %cst_55 = arith.constant dense<0.000000e+00> : vector<128xf32>
    %73 = vector.multi_reduction <add>, %72, %cst_55 [0] : vector<16x128xf32> to vector<128xf32>
    %74 = vector.shape_cast %73 : vector<128xf32> to vector<1x128xf32>
    %75 = tpu.concatenate %71, %74 in 0 : vector<1x128xf32>, vector<1x128xf32> -> vector<2x128xf32>
    %cst_56 = arith.constant dense<0.000000e+00> : vector<2x128xf32>
    %76 = tpu.matmul %75, %0, %cst_56 {dimension_numbers = #tpu.dot_dimension_numbers<[1], [0], [0], [1], [0, 0, 1, 1], [], []>} : vector<2x128xf32>, vector<128x128xf32>, vector<2x128xf32> -> vector<2x128xf32>
    %77 = vector.extract_strided_slice %76 {offsets = [0, 0], sizes = [1, 128], strides = [1, 1]} : vector<2x128xf32> to vector<1x128xf32>
    %cst_57 = arith.constant 3.906250e-03 : f32
    %78 = vector.broadcast %cst_57 : f32 to vector<1x128xf32>
    %79 = arith.mulf %77, %78 : vector<1x128xf32>
    %80 = vector.extract_strided_slice %76 {offsets = [1, 0], sizes = [1, 128], strides = [1, 1]} : vector<2x128xf32> to vector<1x128xf32>
    %cst_58 = arith.constant 3.906250e-03 : f32
    %81 = vector.broadcast %cst_58 : f32 to vector<1x128xf32>
    %82 = arith.mulf %80, %81 : vector<1x128xf32>
    %83 = arith.mulf %79, %79 : vector<1x128xf32>
    %84 = arith.subf %82, %83 : vector<1x128xf32>
    %85 = vector.broadcast %79 : vector<1x128xf32> to vector<16x128xf32>
    %86 = arith.subf %69, %85 : vector<16x128xf32>
    %cst_59 = arith.constant 9.99999974E-6 : f32
    %87 = vector.broadcast %cst_59 : f32 to vector<1x128xf32>
    %88 = arith.addf %84, %87 : vector<1x128xf32>
    %89 = math.rsqrt %88 : vector<1x128xf32>
    %90 = vector.broadcast %89 : vector<1x128xf32> to vector<16x128xf32>
    %91 = arith.mulf %86, %90 : vector<16x128xf32>
    %c0_60 = arith.constant 0 : index
    %c0_61 = arith.constant 0 : index
    %c0_62 = arith.constant 0 : index
    %92 = vector.load %arg1[%c0_60, %c0_61, %c0_62] : memref<1x16x128xf32, #tpu.memory_space<vmem>>, vector<1x16x128xf32>
    %93 = vector.shape_cast %92 : vector<1x16x128xf32> to vector<16x128xf32>
    %94 = arith.addf %91, %93 : vector<16x128xf32>
    %c0_63 = arith.constant 0 : index
    %c0_64 = arith.constant 0 : index
    %c0_65 = arith.constant 0 : index
    %95 = vector.load %arg5[%c0_63, %c0_64, %c0_65] : memref<1x16x128xf32, #tpu.memory_space<vmem>>, vector<1x16x128xf32>
    %96 = vector.shape_cast %95 : vector<1x16x128xf32> to vector<16x128xf32>
    %97 = vector.shape_cast %94 : vector<16x128xf32> to vector<1x16x128xf32>
    tpu.vector_store %arg5[%c0_63, %c0_64, %c0_65], %97 {strides = array<i32>} : memref<1x16x128xf32, #tpu.memory_space<vmem>>, vector<1x16x128xf32>,
    return
  }
  func.func @transform_0(%arg0: i32) -> (i32, i32, i32) {
    %c0_i32 = arith.constant 0 : i32
    %c0_i32_0 = arith.constant 0 : i32
    %c0_i32_1 = arith.constant 0 : i32
    return %arg0, %c0_i32, %c0_i32_0 : i32, i32, i32
  }
  func.func @transform_1(%arg0: i32) -> (i32, i32, i32) {
    %c0_i32 = arith.constant 0 : i32
    %c0_i32_0 = arith.constant 0 : i32
    %c0_i32_1 = arith.constant 0 : i32
    %c0_i32_2 = arith.constant 0 : i32
    return %c0_i32, %c0_i32_0, %c0_i32_1 : i32, i32, i32
  }
  func.func @transform_2(%arg0: i32) -> (i32, i32, i32) {
    %c0_i32 = arith.constant 0 : i32
    %c0_i32_0 = arith.constant 0 : i32
    %c0_i32_1 = arith.constant 0 : i32
    %c0_i32_2 = arith.constant 0 : i32
    return %c0_i32, %c0_i32_0, %c0_i32_1 : i32, i32, i32
  }
  func.func @transform_3(%arg0: i32) -> (i32, i32) {
    %c0_i32 = arith.constant 0 : i32
    %c0_i32_0 = arith.constant 0 : i32
    %c0_i32_1 = arith.constant 0 : i32
    return %c0_i32, %c0_i32_0 : i32, i32
  }
  func.func @transform_4(%arg0: i32) -> (i32, i32, i32) {
    %c0_i32 = arith.constant 0 : i32
    %c0_i32_0 = arith.constant 0 : i32
    %c0_i32_1 = arith.constant 0 : i32
    return %arg0, %c0_i32, %c0_i32_0 : i32, i32, i32
  }
}

</mosaic_0001>

<bundles_post_ra>
// kernel: res_block.1
= control target key start
LH: loop header
LB: loop body
LE: loop exit
PB: predicated region body
PF: predicated region fallthrough
CT: control target
= control target key end

     0   :  { %s1723_s15 = smov 0   ;;  %s2069_s0 = inlined_call_operand.vmem [shape: f32[2,16,128], index: 0, kind: input, shape index: {}]   ;;  %s2070_s1 = inlined_call_operand.vmem [shape: bf16[3,128,128], index: 1, kind: input, shape index: {}]   ;;  %s2071_s2 = inlined_call_operand.vmem [shape: bf16[3,128,128], index: 2, kind: input, shape index: {}]   ;;  %s2072_s3 = inlined_call_operand.vmem [shape: f32[128,128], index: 3, kind: input, shape index: {}]   ;;  %s2073_s4 = inlined_call_operand.vmem [shape: f32[2,16,128], index: 4, kind: output, shape index: {}]  }
   0x1 LB: > { %s1157_s16 = sadd.s32 4294967295, %s1693_s15   ;;  %p1161_p0 = scmp.ge.s32.totalorder %s1693_s15, 1  ;;  %s1693_s15 = sphi %s1723_s15, %s14_s15  }
   0x2   : > { %p162_p1 = scmp.lt.s32.totalorder %s1693_s15, 3 }
   0x4   : > { %p163_p2 = pnand %p1161_p0, %p162_p1 }
   0x5   : > { %v1635_v0 = vld [vmem:[%s2070_s1 + $0x40] sm:$0xff] (!%p163_p2)   ;;  %v1695_v1 = vmov (!%p163_p2), 0.0   ;;  %v1636_v2 = vld [vmem:[%s2070_s1 + $0x48] sm:$0xff] (!%p163_p2)   ;;  %vm1696_vm0 = vmmov (!%p163_p2), 0   ;;  %p188_p3 = scmp.lt.s32.totalorder (!%p163_p2), %s1157_s16, 1  ;;  %v1697_v3 = vmov (!%p163_p2), 0.0|0.0  }
   0x6   : > { %166 = sbr.rel (%p163_p2) target bundleno = 1109 (0x455), region = 36  ;;  %1370 = vmatprep.subr.bf16.mxu0 (!%p163_p2), %v1695_v1  ;;  %215 = vst [vmem:[#allocation2] sm:$0x1] (!%p163_p2), %v1695_v1  ;;  %216 = vst [vmem:[#allocation2 + $0x11] sm:$0x1] (!%p163_p2), %v1695_v1  ;;  %1386 = vmatprep.mubr.msk.bf16.mxu0 (!%p163_p2), %vm1696_vm0, %v1695_v1  ;;  %v1637_v4 = vld [vmem:[%s2070_s1 + $0x50] sm:$0xff] (!%p163_p2)  }
   0x7   : > { %1371 = vmatpush3.bf16.msra.mxu0 (!%p163_p2), %v1635_v0  ;;  %1462 = vmatprep.mubr.msk.f32.mxu1 (!%p163_p2), %vm1696_vm0, %v1695_v1  ;;  %v1638_v7 = vld [vmem:[%s2070_s1 + $0x58] sm:$0xff] (!%p163_p2)   ;;  %v1639_v8 = vld [vmem:[%s2070_s1 + $0x60] sm:$0xff] (!%p163_p2)   ;;  %v1640_v9 = vld [vmem:[%s2070_s1 + $0x68] sm:$0xff] (!%p163_p2)   ;;  %vm565_vm1 = vcmask (!%p163_p2), 1040384  }
   0x8   : > { %1372 = vmatprep.subr.bf16.mxu0 (!%p163_p2), %v1695_v1  ;;  %1560 = vmatprep.subr.bf16.mxu1 (!%p163_p2), %v1697_v3  ;;  %v1641_v10 = vld [vmem:[%s2070_s1 + $0x70] sm:$0xff] (!%p163_p2)   ;;  %v1642_v11 = vld [vmem:[%s2070_s1 + $0x78] sm:$0xff] (!%p163_p2)   ;;  %v199_v12 = vld [vmem:[%s2072_s3] sm:$0xff] (!%p163_p2) }
   0x9   : > { %v200_v13 = vld [vmem:[%s2072_s3 + $0x8] sm:$0xff] (!%p163_p2)  ;;  %v201_v14 = vld [vmem:[%s2072_s3 + $0x10] sm:$0xff] (!%p163_p2)  ;;  %v202_v16 = vld [vmem:[%s2072_s3 + $0x18] sm:$0xff] (!%p163_p2) }
   0xa   : > { %v1793_v15 = vpack.c.bf16 (!%p163_p2), %v200_v13, %v199_v12  ;;  %v1643_v17 = vld [vmem:[%s2070_s1] sm:$0xff] (!%p163_p2)   ;;  %v204_v19 = vld [vmem:[%s2072_s3 + $0x28] sm:$0xff] (!%p163_p2)  ;;  %v1810_v21 = vpack.c.bf16 (!%p163_p2), %v202_v16, %v201_v14  ;;  %v1645_v24 = vld [vmem:[%s2070_s1 + $0x10] sm:$0xff] (!%p163_p2)  }
   0xb   : > { %1373 = vmatpush3.bf16.msra.mxu0 (!%p163_p2), %v1636_v2  ;;  %v203_v18 = vld [vmem:[%s2072_s3 + $0x20] sm:$0xff] (!%p163_p2)  ;;  %v1644_v22 = vld [vmem:[%s2070_s1 + $0x8] sm:$0xff] (!%p163_p2)   ;;  %v1646_v25 = vld [vmem:[%s2070_s1 + $0x18] sm:$0xff] (!%p163_p2)  }
   0xc   : > { %1374 = vmatprep.subr.bf16.mxu0 (!%p163_p2), %v1695_v1  ;;  %1562 = vmatpush3.bf16.msra.mxu1 (!%p163_p2), %v1793_v15  ;;  %v1818_v23 = vpack.c.bf16 (!%p163_p2), %v204_v19, %v203_v18  ;;  %v1647_v26 = vld [vmem:[%s2070_s1 + $0x20] sm:$0xff] (!%p163_p2)   ;;  %v1648_v27 = vld [vmem:[%s2070_s1 + $0x28] sm:$0xff] (!%p163_p2)   ;;  %v1649_v28 = vld [vmem:[%s2070_s1 + $0x30] sm:$0xff] (!%p163_p2)  }
   0xd   : > { %s2075_s16 = smov (!%p188_p3, %s1157_s16), 1  ;;  %1563 = vmatprep.subr.bf16.mxu1 %v1697_v3  ;;  %v1650_v29 = vld [vmem:[%s2070_s1 + $0x38] sm:$0xff]   ;;  %v1651_v33 = vld [vmem:[%s2070_s1 + $0x80] sm:$0xff]   ;;  %v1652_v34 = vld [vmem:[%s2070_s1 + $0x88] sm:$0xff]  }
   0xe   : > { %s1280_s23 = sshll.u32 %s2075_s16, 4  ;;  %v1653_v35 = vld [vmem:[%s2070_s1 + $0x90] sm:$0xff]   ;;  %v1654_v36 = vld [vmem:[%s2070_s1 + $0x98] sm:$0xff]   ;;  %v1655_v37 = vld [vmem:[%s2070_s1 + $0xa0] sm:$0xff]  }
   0xf   : > { %s192_s26 = scalar_lea.vmem %s2069_s0, %s1280_s23  ;;  %1375 = vmatpush3.bf16.msra.mxu0 %v1637_v4  ;;  %v1656_v38 = vld [vmem:[%s2070_s1 + $0xa8] sm:$0xff]   ;;  %v1657_v39 = vld [vmem:[%s2070_s1 + $0xb0] sm:$0xff]   ;;  %v1658_v40 = vld [vmem:[%s2070_s1 + $0xb8] sm:$0xff]   ;;  %s197_s10 = scalar_lea.vmem %s2073_s4, %s1280_s23 }
  0x10   : > { %v1758_v5 = vld [vmem:[%s192_s26] sm:$0xff]  ;;  %v1760_v6 = vld [vmem:[%s192_s26 + $0x8] sm:$0xff]  ;;  %1376 = vmatprep.subr.bf16.mxu0 %v1695_v1  ;;  %1565 = vmatpush3.bf16.msra.mxu1 %v1810_v21  ;;  %v205_v44 = vld [vmem:[%s2072_s3 + $0x30] sm:$0xff] }
  0x11   : > { %219 = vst [vmem:[#allocation2 + $0x1] sm:$0xff] %v1758_v5  ;;  %220 = vst [vmem:[#allocation2 + $0x9] sm:$0xff] %v1760_v6  ;;  %v242_v20 = vpack.c.bf16 %v1760_v6, %v1758_v5  ;;  %1566 = vmatprep.subr.bf16.mxu1 %v1697_v3  ;;  %v206_v45 = vld [vmem:[%s2072_s3 + $0x38] sm:$0xff]  ;;  %v207_v47 = vld [vmem:[%s2072_s3 + $0x40] sm:$0xff] }
  0x12   : > { %v1570_v46 = vpack.c.bf16 %v206_v45, %v205_v44  ;;  %v208_v48 = vld [vmem:[%s2072_s3 + $0x48] sm:$0xff]  ;;  %v209_v50 = vld [vmem:[%s2072_s3 + $0x50] sm:$0xff]  ;;  %v210_v51 = vld [vmem:[%s2072_s3 + $0x58] sm:$0xff] }
  0x13   : > { %1377 = vmatpush3.bf16.msra.mxu0 %v1638_v7  ;;  %v1573_v49 = vpack.c.bf16 %v208_v48, %v207_v47  ;;  %v1576_v52 = vpack.c.bf16 %v210_v51, %v209_v50  ;;  %v211_v53 = vld [vmem:[%s2072_s3 + $0x60] sm:$0xff]  ;;  %v212_v54 = vld [vmem:[%s2072_s3 + $0x68] sm:$0xff]  ;;  %v213_v56 = vld [vmem:[%s2072_s3 + $0x70] sm:$0xff] }
  0x14   : > { %1378 = vmatprep.subr.bf16.mxu0 %v1695_v1  ;;  %1568 = vmatpush3.bf16.msra.mxu1 %v1818_v23  ;;  %v1579_v55 = vpack.c.bf16 %v212_v54, %v211_v53  ;;  %v214_v57 = vld [vmem:[%s2072_s3 + $0x78] sm:$0xff]  ;;  %v1659_v19 = vld [vmem:[%s2071_s2 + $0x40] sm:$0xff]   ;;  %v1669_v50 = vld [vmem:[%s2071_s2 + $0x10] sm:$0xff]  }
  0x15   : > { %1569 = vmatprep.subr.bf16.mxu1 %v1697_v3  ;;  %v1582_v58 = vpack.c.bf16 %v214_v57, %v213_v56  ;;  %v1667_v47 = vld [vmem:[%s2071_s2] sm:$0xff]   ;;  %v1670_v51 = vld [vmem:[%s2071_s2 + $0x18] sm:$0xff]   ;;  %v1672_v53 = vld [vmem:[%s2071_s2 + $0x28] sm:$0xff]  }
  0x16   : > { %v1673_v54 = vld [vmem:[%s2071_s2 + $0x30] sm:$0xff]  }
  0x17   : > { %1379 = vmatpush3.bf16.msra.mxu0 %v1639_v8 }
  0x18   : > { %1380 = vmatprep.subr.bf16.mxu0 %v1695_v1  ;;  %v221_v30 = vld [vmem:[#allocation2] sm:$0xff]  ;;  %v222_v31 = vld [vmem:[#allocation2 + $0x8] sm:$0xff]  ;;  %1571 = vmatpush3.bf16.msra.mxu1 %v1570_v46 }
  0x19   : > { %v223_v32 = vpack.c.bf16 %v222_v31, %v221_v30  ;;  %v438_v41 = vld [vmem:[#allocation2 + $0x2] sm:$0xff]  ;;  %v439_v42 = vld [vmem:[#allocation2 + $0xa] sm:$0xff]  ;;  %1572 = vmatprep.subr.bf16.mxu1 %v1697_v3 }
  0x1a   : > { %v440_v43 = vpack.c.bf16 %v439_v42, %v438_v41 }
  0x1b   : > { %1381 = vmatpush3.bf16.msra.mxu0 %v1640_v9 }
  0x1c   : > { %1382 = vmatprep.subr.bf16.mxu0 %v1695_v1  ;;  %1574 = vmatpush3.bf16.msra.mxu1 %v1573_v49 }
  0x1d   : > { %1575 = vmatprep.subr.bf16.mxu1 %v1697_v3 }
  0x1f   : > { %1383 = vmatpush3.bf16.msra.mxu0 %v1641_v10 }
  0x20   : > { %1384 = vmatprep.subr.bf16.mxu0 %v1695_v1  ;;  %1577 = vmatpush3.bf16.msra.mxu1 %v1576_v52 }
  0x21   : > { %1578 = vmatprep.subr.bf16.mxu1 %v1697_v3 }
  0x23   : > { %1385 = vmatpush3.bf16.msra.mxu0 %v1642_v11 }
  0x24   : > { %1390 = vmatprep.subr.bf16.mxu0 %v1695_v1  ;;  %1580 = vmatpush3.bf16.msra.mxu1 %v1579_v55 }
  0x25   : > { %1581 = vmatprep.subr.bf16.mxu1 %v1697_v3 }
  0x26   : > { %1387 = vmatmul.mubr.bf16.vlgmr.msra.gmra.mrb[0].mxu0 %v242_v20  ;;  %v1660_v20 = vld [vmem:[%s2071_s2 + $0x48] sm:$0xff]  }
  0x27   : > { %1391 = vmatpush3.bf16.msra.mxu0 %v1643_v17  ;;  %1406 = vmatprep.mubr.msk.bf16.mxu0 %vm1696_vm0, %v1695_v1 }
  0x28   : > { %1392 = vmatprep.subr.bf16.mxu0 %v1695_v1  ;;  %1583 = vmatpush3.bf16.msra.mxu1 %v1582_v58 }
  0x29   : > { %1465 = vmatprep.subr.bf16.mxu1 %v1695_v1 }
  0x2b   : > { %1393 = vmatpush3.bf16.msra.mxu0 %v1644_v22  ;;  %v1662_v22 = vld [vmem:[%s2071_s2 + $0x58] sm:$0xff]  }
  0x2c   : > { %1394 = vmatprep.subr.bf16.mxu0 %v1695_v1 }
  0x2f   : > { %1395 = vmatpush3.bf16.msra.mxu0 %v1645_v24  ;;  %v1664_v24 = vld [vmem:[%s2071_s2 + $0x68] sm:$0xff]  }
  0x30   : > { %1396 = vmatprep.subr.bf16.mxu0 %v1695_v1 }
  0x33   : > { %1397 = vmatpush3.bf16.msra.mxu0 %v1646_v25  ;;  %v1665_v25 = vld [vmem:[%s2071_s2 + $0x70] sm:$0xff]  }
  0x34   : > { %1398 = vmatprep.subr.bf16.mxu0 %v1695_v1 }
  0x37   : > { %1399 = vmatpush3.bf16.msra.mxu0 %v1647_v26  ;;  %v1666_v26 = vld [vmem:[%s2071_s2 + $0x78] sm:$0xff]  }
  0x38   : > { %1400 = vmatprep.subr.bf16.mxu0 %v1695_v1 }
  0x3b   : > { %1401 = vmatpush3.bf16.msra.mxu0 %v1648_v27  ;;  %v643_v27 = vlaneseq }
  0x3c   : > { %1402 = vmatprep.subr.bf16.mxu0 %v1695_v1 }
  0x3f   : > { %1403 = vmatpush3.bf16.msra.mxu0 %v1649_v28  ;;  %v1977_v28 = vshrl.u32 %v643_v27, 7 }
  0x40   : > { %1404 = vmatprep.subr.bf16.mxu0 %v1695_v1 }
  0x43   : > { %1405 = vmatpush3.bf16.msra.mxu0 %v1650_v29  ;;  %v645_v29 = vsub.s32 0, %v1977_v28 }
  0x44   : > { %1410 = vmatprep.subr.bf16.mxu0 %v1695_v1 }
  0x46   : > { %1407 = vmatmul.mubr.bf16.vlgmr.msra.gmra.mrb[0].mxu0 %v223_v32 }
  0x47   : > { %1411 = vmatpush3.bf16.msra.mxu0 %v1651_v33  ;;  %1426 = vmatprep.mubr.msk.bf16.mxu0 %vm1696_vm0, %v1695_v1 }
  0x48   : > { %1412 = vmatprep.subr.bf16.mxu0 %v1695_v1 }
  0x4b   : > { %1413 = vmatpush3.bf16.msra.mxu0 %v1652_v34 }
  0x4c   : > { %1414 = vmatprep.subr.bf16.mxu0 %v1695_v1 }
  0x4f   : > { %1415 = vmatpush3.bf16.msra.mxu0 %v1653_v35 }
  0x50   : > { %1416 = vmatprep.subr.bf16.mxu0 %v1695_v1 }
  0x53   : > { %1417 = vmatpush3.bf16.msra.mxu0 %v1654_v36 }
  0x54   : > { %1418 = vmatprep.subr.bf16.mxu0 %v1695_v1 }
  0x57   : > { %1419 = vmatpush3.bf16.msra.mxu0 %v1655_v37 }
  0x58   : > { %1420 = vmatprep.subr.bf16.mxu0 %v1695_v1 }
  0x5b   : > { %1421 = vmatpush3.bf16.msra.mxu0 %v1656_v38 }
  0x5c   : > { %1422 = vmatprep.subr.bf16.mxu0 %v1695_v1 }
  0x5f   : > { %1423 = vmatpush3.bf16.msra.mxu0 %v1657_v39 }
  0x60   : > { %1424 = vmatprep.subr.bf16.mxu0 %v1695_v1 }
  0x63   : > { %1425 = vmatpush3.bf16.msra.mxu0 %v1658_v40  ;;  %v653_v40 = vsub.s32 1, %v1977_v28 }
  0x64   : > { %1584 = vmatprep.subr.bf16.mxu0 %v1697_v3 }
  0x66   : > { %1427 = vmatmul.mubr.bf16.vlgmr.msra.gmra.mrb[0].mxu0 %v440_v43 }
  0x67   : > { %1586 = vmatpush3.bf16.msra.mxu0 %v1793_v15  ;;  %1557 = vmatprep.mubr.msk.f32.mxu0 %vm1696_vm0, %v1695_v1 }
  0x68   : > { %1587 = vmatprep.subr.bf16.mxu0 %v1697_v3 }
  0x6b   : > { %1589 = vmatpush3.bf16.msra.mxu0 %v1810_v21  ;;  %v1661_v21 = vld [vmem:[%s2071_s2 + $0x50] sm:$0xff]  }
  0x6c   : > { %1590 = vmatprep.subr.bf16.mxu0 %v1697_v3 }
  0x6f   : > { %1592 = vmatpush3.bf16.msra.mxu0 %v1818_v23  ;;  %v1663_v23 = vld [vmem:[%s2071_s2 + $0x60] sm:$0xff]  }
  0x70   : > { %1593 = vmatprep.subr.bf16.mxu0 %v1697_v3 }
  0x73   : > { %1595 = vmatpush3.bf16.msra.mxu0 %v1570_v46 }
  0x74   : > { %1596 = vmatprep.subr.bf16.mxu0 %v1697_v3 }
  0x77   : > { %1598 = vmatpush3.bf16.msra.mxu0 %v1573_v49  ;;  %v1668_v49 = vld [vmem:[%s2071_s2 + $0x8] sm:$0xff]  }
  0x78   : > { %1599 = vmatprep.subr.bf16.mxu0 %v1697_v3 }
  0x7b   : > { %1601 = vmatpush3.bf16.msra.mxu0 %v1576_v52  ;;  %v1671_v52 = vld [vmem:[%s2071_s2 + $0x20] sm:$0xff]  }
  0x7c   : > { %1602 = vmatprep.subr.bf16.mxu0 %v1697_v3 }
  0x7f   : > { %1604 = vmatpush3.bf16.msra.mxu0 %v1579_v55  ;;  %v1674_v55 = vld [vmem:[%s2071_s2 + $0x38] sm:$0xff]  }
  0x80   : > { %1605 = vmatprep.subr.bf16.mxu0 %v1697_v3 }
  0x83   : > { %1607 = vmatpush3.bf16.msra.mxu0 %v1582_v58  ;;  %v1675_v58 = vld [vmem:[%s2071_s2 + $0x80] sm:$0xff]  }
 0x139   : > { %v1932_v59 = vpop.f32.mrb[0].mxu0 }
 0x13a   : > { %v1428_v60 = vpop.f32.mrb[1].mxu0  ;;  %v556_v62 = vmul.f32 %v1932_v59, %v1932_v59 }
 0x13b   : > { %v1934_v61 = vpop.f32.mrb[2].mxu0  ;;  %v1676_v60 = vld [vmem:[%s2071_s2 + $0x88] sm:$0xff]  }
 0x13c   : > { %v549_v63 = vadd.f32 %v1934_v61, %v1932_v59  ;;  %v557_v0 = vmul.f32 %v1934_v61, %v1934_v61  ;;  %v1429_v2 = vpop.f32.mrb[3].mxu0 }
 0x13d   : > { %v1681_v2 = vld [vmem:[%s2071_s2 + $0xb0] sm:$0xff]  }
 0x13e   : > { %v550_v3 = vrot.slane %v549_v63, 4  ;;  %v558_v4 = vadd.f32 %v557_v0, %v556_v62  ;;  %v1678_v62 = vld [vmem:[%s2071_s2 + $0x98] sm:$0xff]   ;;  %v1680_v0 = vld [vmem:[%s2071_s2 + $0xa8] sm:$0xff]  }
 0x140   : > { %v551_v7 = vadd.f32 %v550_v3, %v549_v63  ;;  %v559_v8 = vrot.slane %v558_v4, 4  ;;  %v1679_v63 = vld [vmem:[%s2071_s2 + $0xa0] sm:$0xff]   ;;  %v1682_v3 = vld [vmem:[%s2071_s2 + $0xb8] sm:$0xff]  }
 0x142   : > { %v552_v9 = vrot.slane %v551_v7, 2  ;;  %v560_v10 = vadd.f32 %v559_v8, %v558_v4 }
 0x144   : > { %v553_v11 = vadd.f32 %v552_v9, %v551_v7  ;;  %v561_v12 = vrot.slane %v560_v10, 2 }
 0x146   : > { %v554_v13 = vrot.slane %v553_v11, 1  ;;  %v562_v14 = vadd.f32 %v561_v12, %v560_v10 }
 0x148   : > { %v563_v15 = vrot.slane %v562_v14, 1  ;;  %v555_v16 = vadd.f32 %v554_v13, %v553_v11 }
 0x14a   : > { %v564_v17 = vadd.f32 %v563_v15, %v562_v14 }
 0x14c   : > { %v566_v18 = vsel %vm565_vm1, %v555_v16, %v564_v17 }
 0x14d   : > { %1463 = vmatmul.mubr.f32.vlgmr.msra.gmra.mrb[0].mxu1 %v566_v18 }
 0x14e   : > { %1481 = vmatprep.mubr.msk.bf16.mxu1 %vm1696_vm0, %v1695_v1  ;;  %1466 = vmatpush3.bf16.msra.mxu1 %v1659_v19 }
 0x14f   : > { %1467 = vmatprep.subr.bf16.mxu1 %v1695_v1 }
 0x152   : > { %1468 = vmatpush3.bf16.msra.mxu1 %v1660_v20 }
 0x153   : > { %1469 = vmatprep.subr.bf16.mxu1 %v1695_v1 }
 0x156   : > { %1470 = vmatpush3.bf16.msra.mxu1 %v1661_v21 }
 0x157   : > { %1471 = vmatprep.subr.bf16.mxu1 %v1695_v1 }
 0x15a   : > { %1472 = vmatpush3.bf16.msra.mxu1 %v1662_v22 }
 0x15b   : > { %1473 = vmatprep.subr.bf16.mxu1 %v1695_v1 }
 0x15e   : > { %1474 = vmatpush3.bf16.msra.mxu1 %v1663_v23 }
 0x15f   : > { %1475 = vmatprep.subr.bf16.mxu1 %v1695_v1 }
 0x162   : > { %1476 = vmatpush3.bf16.msra.mxu1 %v1664_v24 }
 0x163   : > { %1477 = vmatprep.subr.bf16.mxu1 %v1695_v1 }
 0x166   : > { %1478 = vmatpush3.bf16.msra.mxu1 %v1665_v25 }
 0x167   : > { %1479 = vmatprep.subr.bf16.mxu1 %v1695_v1 }
 0x16a   : > { %1480 = vmatpush3.bf16.msra.mxu1 %v1666_v26 }
 0x16b   : > { %1485 = vmatprep.subr.bf16.mxu1 %v1695_v1 }
 0x220   : > { %v633_v30 = vpop.f32.mrb[0].mxu1 }
 0x221   : > { %v637_v31 = vmul.f32 0.00390625, %v633_v30  ;;  %v1464_v32 = vpop.f32.mrb[1].mxu1 }
 0x223   : > { %v638_v33 = vmul.f32 %v637_v31, %v637_v31  ;;  %v646_v34 = vrot.slane %v637_v31, %v645_v29 }
 0x225   : > { %v640_v35 = vrot.slane %v638_v33, 7  ;;  %v647_v36 = vsub.f32 %v1932_v59, %v646_v34  ;;  %v648_v37 = vsub.f32 %v1934_v61, %v646_v34  ;;  %v1677_v61 = vld [vmem:[%s2071_s2 + $0x90] sm:$0xff]  }
 0x227   : > { %v642_v38 = vsub.f32 %v637_v31, %v640_v35 }
 0x229   : > { %v649_v39 = vadd.f32 1e-05, %v642_v38 }
 0x22b   : > { %1683 = vrsqrt.f32 %v649_v39 }
 0x235   : > { %v1684_v41 = vpop.eup %1683 }
 0x236   : > { %v654_v42 = vrot.slane %v1684_v41, %v653_v40 }
 0x238   : > { %v655_v43 = vmul.f32 %v654_v42, %v647_v36  ;;  %v656_v44 = vmul.f32 %v654_v42, %v648_v37 }
 0x23a   : > { %v657_v45 = vmax.f32 %v655_v43, 0.0  ;;  %v658_v46 = vmax.f32 %v656_v44, 0.0 }
 0x23c   : > { %659 = vst [vmem:[#allocation2 + $0x1] sm:$0xff] %v657_v45  ;;  %660 = vst [vmem:[#allocation2 + $0x9] sm:$0xff] %v658_v46  ;;  %v682_v48 = vpack.c.bf16 %v658_v46, %v657_v45 }
 0x23e   : > { %1482 = vmatmul.mubr.bf16.vlgmr.msra.gmra.mrb[4].mxu1 %v682_v48 }
 0x23f   : > { %1486 = vmatpush3.bf16.msra.mxu1 %v1667_v47  ;;  %1501 = vmatprep.mubr.msk.bf16.mxu1 %vm1696_vm0, %v1695_v1 }
 0x240   : > { %1487 = vmatprep.subr.bf16.mxu1 %v1695_v1 }
 0x243   : > { %1488 = vmatpush3.bf16.msra.mxu1 %v1668_v49  ;;  %v661_v56 = vld [vmem:[#allocation2] sm:$0xff]  ;;  %v662_v57 = vld [vmem:[#allocation2 + $0x8] sm:$0xff] }
 0x244   : > { %1489 = vmatprep.subr.bf16.mxu1 %v1695_v1  ;;  %v663_v59 = vpack.c.bf16 %v662_v57, %v661_v56  ;;  %v878_v4 = vld [vmem:[#allocation2 + $0x2] sm:$0xff]  ;;  %v879_v7 = vld [vmem:[#allocation2 + $0xa] sm:$0xff] }
 0x245   : > { %v880_v8 = vpack.c.bf16 %v879_v7, %v878_v4 }
 0x247   : > { %1490 = vmatpush3.bf16.msra.mxu1 %v1669_v50 }
 0x248   : > { %1491 = vmatprep.subr.bf16.mxu1 %v1695_v1 }
 0x24b   : > { %1492 = vmatpush3.bf16.msra.mxu1 %v1670_v51 }
 0x24c   : > { %1493 = vmatprep.subr.bf16.mxu1 %v1695_v1 }
 0x24f   : > { %1494 = vmatpush3.bf16.msra.mxu1 %v1671_v52 }
 0x250   : > { %1495 = vmatprep.subr.bf16.mxu1 %v1695_v1 }
 0x253   : > { %1496 = vmatpush3.bf16.msra.mxu1 %v1672_v53 }
 0x254   : > { %1497 = vmatprep.subr.bf16.mxu1 %v1695_v1 }
 0x257   : > { %1498 = vmatpush3.bf16.msra.mxu1 %v1673_v54 }
 0x258   : > { %1499 = vmatprep.subr.bf16.mxu1 %v1695_v1 }
 0x25b   : > { %1500 = vmatpush3.bf16.msra.mxu1 %v1674_v55 }
 0x25c   : > { %1505 = vmatprep.subr.bf16.mxu1 %v1695_v1 }
 0x25e   : > { %1502 = vmatmul.mubr.bf16.vlgmr.msra.gmra.mrb[4].mxu1 %v663_v59 }
 0x25f   : > { %1506 = vmatpush3.bf16.msra.mxu1 %v1675_v58  ;;  %1521 = vmatprep.mubr.msk.bf16.mxu1 %vm1696_vm0, %v1695_v1 }
 0x260   : > { %1507 = vmatprep.subr.bf16.mxu1 %v1695_v1 }
 0x263   : > { %1508 = vmatpush3.bf16.msra.mxu1 %v1676_v60 }
 0x264   : > { %1509 = vmatprep.subr.bf16.mxu1 %v1695_v1 }
 0x267   : > { %1510 = vmatpush3.bf16.msra.mxu1 %v1677_v61 }
 0x268   : > { %1511 = vmatprep.subr.bf16.mxu1 %v1695_v1 }
 0x26b   : > { %1512 = vmatpush3.bf16.msra.mxu1 %v1678_v62 }
 0x26c   : > { %1513 = vmatprep.subr.bf16.mxu1 %v1695_v1 }
 0x26f   : > { %1514 = vmatpush3.bf16.msra.mxu1 %v1679_v63 }
 0x270   : > { %1515 = vmatprep.subr.bf16.mxu1 %v1695_v1 }
 0x273   : > { %1516 = vmatpush3.bf16.msra.mxu1 %v1680_v0 }
 0x274   : > { %1517 = vmatprep.subr.bf16.mxu1 %v1695_v1 }
 0x277   : > { %1518 = vmatpush3.bf16.msra.mxu1 %v1681_v2 }
 0x278   : > { %1519 = vmatprep.subr.bf16.mxu1 %v1695_v1 }
 0x27b   : > { %1520 = vmatpush3.bf16.msra.mxu1 %v1682_v3 }
 0x27e   : > { %1522 = vmatmul.mubr.bf16.vlgmr.msra.gmra.mrb[4].mxu1 %v880_v8 }
 0x351   : > { %v980_v9 = vpop.f32.mrb[4].mxu1 }
 0x352   : > { %v1523_v10 = vpop.f32.mrb[5].mxu1  ;;  %v996_v12 = vmul.f32 %v980_v9, %v980_v9 }
 0x353   : > { %v983_v11 = vpop.f32.mrb[6].mxu1 }
 0x354   : > { %v989_v13 = vadd.f32 %v983_v11, %v980_v9  ;;  %v997_v14 = vmul.f32 %v983_v11, %v983_v11  ;;  %v1524_v15 = vpop.f32.mrb[7].mxu1 }
 0x356   : > { %v990_v16 = vrot.slane %v989_v13, 4  ;;  %v998_v17 = vadd.f32 %v997_v14, %v996_v12 }
 0x358   : > { %v991_v18 = vadd.f32 %v990_v16, %v989_v13  ;;  %v999_v19 = vrot.slane %v998_v17, 4 }
 0x35a   : > { %v992_v20 = vrot.slane %v991_v18, 2  ;;  %v1000_v21 = vadd.f32 %v999_v19, %v998_v17 }
 0x35c   : > { %v993_v22 = vadd.f32 %v992_v20, %v991_v18  ;;  %v1001_v1 = vrot.slane %v1000_v21, 2 }
 0x35e   : > { %v994_v23 = vrot.slane %v993_v22, 1  ;;  %v1002_v24 = vadd.f32 %v1001_v1, %v1000_v21 }
 0x360   : > { %v1003_v25 = vrot.slane %v1002_v24, 1  ;;  %v995_v26 = vadd.f32 %v994_v23, %v993_v22 }
 0x362   : > { %v1004_v27 = vadd.f32 %v1003_v25, %v1002_v24 }
 0x364   : > { %v1005_v30 = vsel %vm565_vm1, %v995_v26, %v1004_v27 }
 0x365   : > { %1558 = vmatmul.mubr.f32.vlgmr.msra.gmra.mrb[4].mxu0 %v1005_v30 }
 0x438   : > { %v1072_v31 = vpop.f32.mrb[4].mxu0 }
 0x439   : > { %v1076_v32 = vmul.f32 0.00390625, %v1072_v31  ;;  %v1559_v33 = vpop.f32.mrb[5].mxu0 }
 0x43b   : > { %v1077_v34 = vmul.f32 %v1076_v32, %v1076_v32  ;;  %v1085_v35 = vrot.slane %v1076_v32, %v645_v29 }
 0x43d   : > { %v1079_v36 = vrot.slane %v1077_v34, 7  ;;  %v1086_v37 = vsub.f32 %v980_v9, %v1085_v35  ;;  %v1087_v38 = vsub.f32 %v983_v11, %v1085_v35 }
 0x43f   : > { %v1081_v39 = vsub.f32 %v1076_v32, %v1079_v36 }
 0x441   : > { %v1088_v41 = vadd.f32 1e-05, %v1081_v39 }
 0x443   : > { %1685 = vrsqrt.f32 %v1088_v41 }
 0x44d   : > { %v1686_v42 = vpop.eup %1685 }
 0x44e   : > { %v1093_v43 = vrot.slane %v1686_v42, %v653_v40 }
 0x450   : > { %v1094_v44 = vmul.f32 %v1093_v43, %v1086_v37  ;;  %v1095_v45 = vmul.f32 %v1093_v43, %v1087_v38 }
 0x452   : > { %v1098_v46 = vadd.f32 %v1094_v44, %v1758_v5  ;;  %v1099_v29 = vadd.f32 %v1095_v45, %v1760_v6 }
 0x454   : > { %1100 = vst [vmem:[%s197_s10] sm:$0xff] %v1098_v46  ;;  %1101 = vst [vmem:[%s197_s10 + $0x8] sm:$0xff] %v1099_v29 }
 0x455 PF: > { %s14_s15 = sadd.s32 1, %s1693_s15  }
 0x456   : > { %p11_p4 = scmp.ge.s32.totalorder %s14_s15, 4  }
 0x458   :  { %13 = sbr.rel (!%p11_p4) target bundleno = 1 (0x1), region = 70 }

</bundles_post_ra>
